<compile_context>
chip_gen: v6e
topology: v6e:2x2x1
jax: 0.10.0
libtpu: 0.0.40
codegen_flags: <defaults>
</compile_context>

<pallas_src>
import functools

import jax
import jax.numpy as jnp
from jax import lax
from jax.experimental import pallas as pl
from jax.experimental.pallas import tpu as pltpu


def _round_up(v, m):
    return (v + m - 1) // m * m


def _fused_act(h, half):
    """SiLU on lanes where `half` is True, Tanh elsewhere; one EUP op/element.

    silu(x) = x * sigmoid(x);  tanh(x) = 2 * sigmoid(2x) - 1.
    """
    s = jax.nn.sigmoid(jnp.where(half, h, 2.0 * h))
    return jnp.where(half, h * s, 2.0 * s - 1.0)


def _vmem_capacity_bytes():
    try:
        return int(pltpu.get_tpu_info().vmem_capacity_bytes)
    except Exception:
        return 64 << 20            # conservative fallback (v7x-sized VMEM)


def egnn_lspe_kernel(
    send_col_ref, rec_col_ref, rec_row_ref,   # int32 edge indices for this tile
    slab_ref,                                 # [N, S] bf16 node slab
    w1s_ref, w1r_ref, w1d_ref, b1_ref,        # fused message first layer
    w2_ref, b2_ref,                           # fused message second layer
    posmask_ref,                              # [1, S] selector of pos columns
    wu1n_ref, wu1a_ref, bu1_ref,              # fused update first layer
    wu2_ref, bu2_ref,                         # fused update second layer
    out_ref,
    aggr_acc,                                 # VMEM scratch [N, W] f32
    *, hidden,
):
    e = pl.program_id(0)
    f32, bf16 = jnp.float32, jnp.bfloat16
    W = b1_ref.shape[1]
    N = slab_ref.shape[0]
    tE = send_col_ref.shape[0]

    @pl.when(e == 0)
    def _init():
        aggr_acc[...] = jnp.zeros_like(aggr_acc)

    # Lane-half mask: lanes [0, H) -> SiLU branch (message_mlp / update_mlp),
    # lanes [H, W) -> Tanh branch (message_pos_mlp / update_pos_mlp).
    half = lax.broadcasted_iota(jnp.int32, (1, W), 1) < hidden

    slab = slab_ref[...]                       # [N, S] bf16 (x | pe | pos | 0)

    # ---- build one-hots in-kernel from int32 indices (VPU iota-compare). ----
    # Padded edges carry index -1 -> all-zero one-hot rows/columns.
    send_col = send_col_ref[...]               # [tE, 1]
    rec_col = rec_col_ref[...]                 # [tE, 1]
    rec_row = rec_row_ref[...]                 # [1, tE]
    lane_nodes = lax.broadcasted_iota(jnp.int32, (tE, N), 1)
    soh = (lane_nodes == send_col).astype(bf16)        # [tE, N]
    roh = (lane_nodes == rec_col).astype(bf16)         # [tE, N]
    sub_nodes = lax.broadcasted_iota(jnp.int32, (N, tE), 0)
    roh_t = (sub_nodes == rec_row).astype(bf16)        # [N, tE] (no XLU transpose)

    # ---- edge gathers: 2 MXU matmuls (exact one-hot selection). ----
    # TODO(synk): replace with an index-based row gather once N >> S.
    slab_s_f = jnp.dot(soh, slab, preferred_element_type=f32)   # [tE, S]
    slab_r_f = jnp.dot(roh, slab, preferred_element_type=f32)   # [tE, S]
    slab_s = slab_s_f.astype(bf16)     # exact: gathered values are bf16 already
    slab_r = slab_r_f.astype(bf16)

    # ---- pairwise distance (pos columns only, masked lane reduce, f32). ----
    # Note: positions are bf16-rounded in the slab (~1e-3 relative error).
    diff = slab_s_f - slab_r_f
    d2 = jnp.sum(diff * diff * posmask_ref[...], axis=-1, keepdims=True)
    dist = jnp.sqrt(d2)                                          # [tE, 1]

    # ---- fused message_mlp | message_pos_mlp ----
    h1 = (jnp.dot(slab_s, w1s_ref[...], preferred_element_type=f32)
          + jnp.dot(slab_r, w1r_ref[...], preferred_element_type=f32)
          + dist * w1d_ref[...] + b1_ref[...])                   # [tE, W]
    h1 = _fused_act(h1, half).astype(bf16)
    m = jnp.dot(h1, w2_ref[...], preferred_element_type=f32) + b2_ref[...]
    msg = _fused_act(m, half).astype(bf16)                       # [tE, W]

    # ---- scatter_add over receiving nodes: plain matmul with roh_t ----
    aggr_acc[...] += jnp.dot(roh_t, msg, preferred_element_type=f32)   # [N, W]

    # ---- last edge tile: fused update_mlp | update_pos_mlp ----
    # TODO(synk): on v7x consider a tiny second pallas_call for this epilogue so
    #   the update weights are not VMEM-resident during the edge loop.
    @pl.when(e == pl.num_programs(0) - 1)
    def _finish():
        aggr = aggr_acc[...].astype(bf16)                        # [N, W]
        hu = (jnp.dot(slab, wu1n_ref[...], preferred_element_type=f32)
              + jnp.dot(aggr, wu1a_ref[...], preferred_element_type=f32)
              + bu1_ref[...])
        hu = _fused_act(hu, half).astype(bf16)
        o = jnp.dot(hu, wu2_ref[...], preferred_element_type=f32) + bu2_ref[...]
        # update_mlp has no final activation; update_pos_mlp ends with tanh.
        out_ref[...] = jnp.where(half, o, jnp.tanh(o))           # [N, W] f32


def egnn_lspe_layer(x, pos, edge_index, pe, params, *, edge_tile=512):
    """Pallas-backed EGNNLSPELayer.forward (include_dist=True)."""
    N, H = x.shape
    E = edge_index.shape[1]
    (wm1, bm1, wm2, bm2, wp1, bp1, wp2, bp2,
     wu1, bu1, wu2, bu2, wq1, bq1, wq2, bq2) = params

    f32, bf16 = jnp.float32, jnp.bfloat16
    S = _round_up(2 * H + 3, 128)       # node slab width (lane-dense)
    W = _round_up(2 * H, 128)           # fused hidden / output width (lane-dense)

    # ---- node feature slab [N, S] = [x | pe | pos | 0] ----
    slab = jnp.zeros((N, S), f32)
    slab = slab.at[:, 0:H].set(x.astype(f32))
    slab = slab.at[:, H:2 * H].set(pe.astype(f32))
    slab = slab.at[:, 2 * H:2 * H + 3].set(pos.astype(f32))
    slab = slab.astype(bf16)

    # ---- per-tile int32 edge indices (one-hots are built in-kernel) ----
    edge_tile = _round_up(max(int(edge_tile), 8), 128)
    send = edge_index[0].astype(jnp.int32)
    rec = edge_index[1].astype(jnp.int32)
    tE = min(edge_tile, _round_up(E, 8))
    E_pad = _round_up(E, tE)
    pad = E_pad - E
    send_p = jnp.pad(send, (0, pad), constant_values=-1)    # -1: matches no node
    rec_p = jnp.pad(rec, (0, pad), constant_values=-1)
    send_col = send_p.reshape(E_pad, 1)                     # sublane layout
    rec_col = rec_p.reshape(E_pad, 1)
    rec_row = rec_p.reshape(1, E_pad)                       # lane layout (scatter)

    # ---- fused weight packing ----
    # message_mlp occupies lanes [0, H); message_pos_mlp occupies lanes [H, 2H).
    w1s = jnp.zeros((S, W), f32)
    w1s = w1s.at[0:H, 0:H].set(wm1[0:H])                 # x_send
    w1s = w1s.at[H:2 * H, 0:H].set(wm1[H:2 * H])         # pe_send
    w1s = w1s.at[H:2 * H, H:2 * H].set(wp1[0:H])         # pe_send (pos branch)

    w1r = jnp.zeros((S, W), f32)
    w1r = w1r.at[0:H, 0:H].set(wm1[2 * H:3 * H])         # x_rec
    w1r = w1r.at[H:2 * H, 0:H].set(wm1[3 * H:4 * H])     # pe_rec
    w1r = w1r.at[H:2 * H, H:2 * H].set(wp1[H:2 * H])     # pe_rec (pos branch)

    w1d = jnp.zeros((1, W), f32)
    w1d = w1d.at[:, 0:H].set(wm1[4 * H:4 * H + 1])
    w1d = w1d.at[:, H:2 * H].set(wp1[2 * H:2 * H + 1])

    b1 = jnp.zeros((1, W), f32).at[:, 0:H].set(bm1).at[:, H:2 * H].set(bp1)
    w2 = jnp.zeros((W, W), f32).at[0:H, 0:H].set(wm2).at[H:2 * H, H:2 * H].set(wp2)
    b2 = jnp.zeros((1, W), f32).at[:, 0:H].set(bm2).at[:, H:2 * H].set(bp2)

    pos_mask = jnp.zeros((1, S), f32).at[:, 2 * H:2 * H + 3].set(1.0)

    # update_mlp occupies lanes [0, H); update_pos_mlp occupies lanes [H, 2H).
    wu1n = jnp.zeros((S, W), f32)
    wu1n = wu1n.at[0:H, 0:H].set(wu1[0:H])               # x
    wu1n = wu1n.at[H:2 * H, 0:H].set(wu1[H:2 * H])       # pe
    wu1n = wu1n.at[H:2 * H, H:2 * H].set(wq1[0:H])       # pe (pos branch)

    wu1a = jnp.zeros((W, W), f32)
    wu1a = wu1a.at[0:H, 0:H].set(wu1[2 * H:3 * H])       # aggr
    wu1a = wu1a.at[H:2 * H, H:2 * H].set(wq1[H:2 * H])   # pos_aggr

    bu1c = jnp.zeros((1, W), f32).at[:, 0:H].set(bu1).at[:, H:2 * H].set(bq1)
    wu2c = jnp.zeros((W, W), f32).at[0:H, 0:H].set(wu2).at[H:2 * H, H:2 * H].set(wq2)
    bu2c = jnp.zeros((1, W), f32).at[:, 0:H].set(bu2).at[:, H:2 * H].set(bq2)

    bf = lambda a: a.astype(bf16)
    inputs = (send_col, rec_col, rec_row, slab,
              bf(w1s), bf(w1r), w1d, b1, bf(w2), b2, pos_mask,
              bf(wu1n), bf(wu1a), bu1c, bf(wu2c), bu2c)

    def resident(a):
        shape = a.shape
        return pl.BlockSpec(shape, lambda e: (0,) * len(shape))

    idx_col_spec = pl.BlockSpec((tE, 1), lambda e: (e, 0))
    idx_row_spec = pl.BlockSpec((1, tE), lambda e: (0, e))
    in_specs = ([idx_col_spec, idx_col_spec, idx_row_spec]
                + [resident(a) for a in inputs[3:]])
    out_specs = pl.BlockSpec((N, W), lambda e: (0, 0))
    out_shape = jax.ShapeDtypeStruct((N, W), f32)
    grid = (E_pad // tE,)

    # Generation-aware VMEM limit: footprint estimate (resident constants
    # counted at 2x), capped below physical capacity minus headroom
    # (v5e/v6e ~128 MiB, v7x ~64 MiB).
    resident_bytes = sum(int(a.size) * a.dtype.itemsize for a in inputs[3:])
    idx_bytes = 2 * (2 * tE * 128 + 8 * tE) * 4          # VMEM-tiled, dbl-buffered
    interm_bytes = tE * (3 * N * 2 + 5 * S * 4 + 6 * W * 4)
    node_bytes = 6 * N * W * 4                           # acc + out + finish temps
    need = 2 * resident_bytes + idx_bytes + interm_bytes + node_bytes
    cap = _vmem_capacity_bytes()
    headroom = max(16 << 20, cap // 5)
    vmem_limit = int(min(max(2 * need, 4 << 20), cap - headroom))

    out = pl.pallas_call(
        functools.partial(egnn_lspe_kernel, hidden=H),
        grid=grid,
        in_specs=in_specs,
        out_specs=out_specs,
        out_shape=out_shape,
        scratch_shapes=[pltpu.VMEM((N, W), f32)],
        compiler_params=pltpu.CompilerParams(
            dimension_semantics=("arbitrary",),          # edge axis is a reduction
            vmem_limit_bytes=vmem_limit),
    )(*inputs)

    return out[:, 0:H], out[:, H:2 * H]


def egnn_lspe_ref(x, pos, edge_index, pe, params):
    """Plain-JAX f32 reference (mirrors the intended PyTorch semantics)."""
    (wm1, bm1, wm2, bm2, wp1, bp1, wp2, bp2,
     wu1, bu1, wu2, bu2, wq1, bq1, wq2, bq2) = params
    send, rec = edge_index[0], edge_index[1]
    x_s, x_r = x[send], x[rec]
    pe_s, pe_r = pe[send], pe[rec]
    dist = jnp.linalg.norm(pos[send] - pos[rec], axis=1, keepdims=True)
    state = jnp.concatenate([x_s, pe_s, x_r, pe_r, dist], axis=1)
    state_pe = jnp.concatenate([pe_s, pe_r, dist], axis=1)
    silu = jax.nn.silu
    message = silu(silu(state @ wm1 + bm1) @ wm2 + bm2)
    pos_msg = jnp.tanh(jnp.tanh(state_pe @ wp1 + bp1) @ wp2 + bp2)
    N = x.shape[0]
    aggr = jax.ops.segment_sum(message, rec, num_segments=N)
    pos_aggr = jax.ops.segment_sum(pos_msg, rec, num_segments=N)
    upd = silu(jnp.concatenate([x, pe, aggr], 1) @ wu1 + bu1) @ wu2 + bu2
    upd_pe = jnp.tanh(
        jnp.tanh(jnp.concatenate([pe, pos_aggr], 1) @ wq1 + bq1) @ wq2 + bq2)
    return upd, upd_pe


def init_params(key, H):
    """Deterministic Linear params: W [in, out], b [1, out] (uniform fan-in)."""
    layer_shapes = [
        ((4 * H + 1, H), (1, H)), ((H, H), (1, H)),   # message_mlp
        ((2 * H + 1, H), (1, H)), ((H, H), (1, H)),   # message_pos_mlp
        ((3 * H, H), (1, H)), ((H, H), (1, H)),       # update_mlp
        ((2 * H, H), (1, H)), ((H, H), (1, H)),       # update_pos_mlp
    ]
    params = []
    keys = jax.random.split(key, len(layer_shapes))
    for k, (ws, bs) in zip(keys, layer_shapes):
        kw, kb = jax.random.split(k)
        bound = 1.0 / (ws[0] ** 0.5)
        params.append(jax.random.uniform(kw, ws, jnp.float32, -bound, bound))
        params.append(jax.random.uniform(kb, bs, jnp.float32, -bound, bound))
    return tuple(params)


if __name__ == "__main__":
    key = jax.random.PRNGKey(0)
    H = 32   # hidden_channels
    N = 8    # nodes
    E = 16   # edges
    ks = jax.random.split(key, 6)
    x = jax.random.normal(ks[0], (N, H), jnp.float32)
    pe = jax.random.normal(ks[1], (N, H), jnp.float32)
    pos = jax.random.normal(ks[2], (N, 3), jnp.float32)
    send = jax.random.randint(ks[3], (E,), 0, N)
    rec = jax.random.randint(ks[4], (E,), 0, N)
    edge_index = jnp.stack([send, rec], axis=0)   # [2, E]
    params = init_params(ks[5], H)

    upd, upd_pe = egnn_lspe_layer(x, pos, edge_index, pe, params)
    jax.block_until_ready((upd, upd_pe))

    ref_upd, ref_upd_pe = egnn_lspe_ref(x, pos, edge_index, pe, params)
    assert upd.shape == (N, H) and upd_pe.shape == (N, H)
    # bf16 matmul operands with f32 accumulation -> allow ~2e-2 abs tolerance.
    assert float(jnp.max(jnp.abs(upd - ref_upd))) < 2e-2
    assert float(jnp.max(jnp.abs(upd_pe - ref_upd_pe))) < 2e-2
    print("KERNEL_OK")
</pallas_src>

<mosaic_0001>
module attributes {stable_mosaic.version = 11 : i64} {
  func.func @egnn_lspe_kernel(%arg0: i32, %arg1: memref<16x1xi32, #tpu.memory_space<vmem>>, %arg2: memref<16x1xi32, #tpu.memory_space<vmem>>, %arg3: memref<1x16xi32, #tpu.memory_space<vmem>>, %arg4: memref<8x128xbf16, #tpu.memory_space<vmem>>, %arg5: memref<128x128xbf16, #tpu.memory_space<vmem>>, %arg6: memref<128x128xbf16, #tpu.memory_space<vmem>>, %arg7: memref<1x128xf32, #tpu.memory_space<vmem>>, %arg8: memref<1x128xf32, #tpu.memory_space<vmem>>, %arg9: memref<128x128xbf16, #tpu.memory_space<vmem>>, %arg10: memref<1x128xf32, #tpu.memory_space<vmem>>, %arg11: memref<1x128xf32, #tpu.memory_space<vmem>>, %arg12: memref<128x128xbf16, #tpu.memory_space<vmem>>, %arg13: memref<128x128xbf16, #tpu.memory_space<vmem>>, %arg14: memref<1x128xf32, #tpu.memory_space<vmem>>, %arg15: memref<128x128xbf16, #tpu.memory_space<vmem>>, %arg16: memref<1x128xf32, #tpu.memory_space<vmem>>, %arg17: memref<8x128xf32, #tpu.memory_space<vmem>>, %arg18: memref<8x128xf32, #tpu.memory_space<vmem>>) attributes {dimension_semantics = [#tpu.dimension_semantics<arbitrary>], iteration_bounds = array<i64: 1>, scalar_prefetch = 0 : i64, scratch_operands = 1 : i64, tpu.core_type = #tpu.core_type<tc>, window_params = [{transform_indices = @transform_0, window_bounds = array<i64: 16, 1>}, {transform_indices = @transform_1, window_bounds = array<i64: 16, 1>}, {transform_indices = @transform_2, window_bounds = array<i64: 1, 16>}, {pipeline_mode = #tpu.pipeline_mode<synchronous>, transform_indices = @transform_3, window_bounds = array<i64: 8, 128>}, {pipeline_mode = #tpu.pipeline_mode<synchronous>, transform_indices = @transform_4, window_bounds = array<i64: 128, 128>}, {pipeline_mode = #tpu.pipeline_mode<synchronous>, transform_indices = @transform_5, window_bounds = array<i64: 128, 128>}, {pipeline_mode = #tpu.pipeline_mode<synchronous>, transform_indices = @transform_6, window_bounds = array<i64: 1, 128>}, {pipeline_mode = #tpu.pipeline_mode<synchronous>, transform_indices = @transform_7, window_bounds = array<i64: 1, 128>}, {pipeline_mode = #tpu.pipeline_mode<synchronous>, transform_indices = @transform_8, window_bounds = array<i64: 128, 128>}, {pipeline_mode = #tpu.pipeline_mode<synchronous>, transform_indices = @transform_9, window_bounds = array<i64: 1, 128>}, {pipeline_mode = #tpu.pipeline_mode<synchronous>, transform_indices = @transform_10, window_bounds = array<i64: 1, 128>}, {pipeline_mode = #tpu.pipeline_mode<synchronous>, transform_indices = @transform_11, window_bounds = array<i64: 128, 128>}, {pipeline_mode = #tpu.pipeline_mode<synchronous>, transform_indices = @transform_12, window_bounds = array<i64: 128, 128>}, {pipeline_mode = #tpu.pipeline_mode<synchronous>, transform_indices = @transform_13, window_bounds = array<i64: 1, 128>}, {pipeline_mode = #tpu.pipeline_mode<synchronous>, transform_indices = @transform_14, window_bounds = array<i64: 128, 128>}, {pipeline_mode = #tpu.pipeline_mode<synchronous>, transform_indices = @transform_15, window_bounds = array<i64: 1, 128>}, {pipeline_mode = #tpu.pipeline_mode<synchronous>, transform_indices = @transform_16, window_bounds = array<i64: 8, 128>}]} {
    %c0_i32 = arith.constant 0 : i32
    %0 = arith.cmpi eq, %arg0, %c0_i32 : i32
    %1 = arith.extui %0 : i1 to i32
    %c0_i32_0 = arith.constant 0 : i32
    %2 = arith.cmpi ne, %1, %c0_i32_0 : i32
    scf.if %2 {
      %cst_42 = arith.constant 0.000000e+00 : f32
      %102 = vector.broadcast %cst_42 : f32 to vector<8x128xf32>
      %c0_43 = arith.constant 0 : index
      %c0_44 = arith.constant 0 : index
      %103 = vector.load %arg18[%c0_43, %c0_44] : memref<8x128xf32, #tpu.memory_space<vmem>>, vector<8x128xf32>
      tpu.vector_store %arg18[%c0_43, %c0_44], %102 {strides = array<i32>} : memref<8x128xf32, #tpu.memory_space<vmem>>, vector<8x128xf32>,
    } else {
    }
    %3 = tpu.iota {dimensions = array<i32: 1>} : vector<1x128xi32>
    %c32_i32 = arith.constant 32 : i32
    %4 = vector.broadcast %c32_i32 : i32 to vector<1x128xi32>
    %5 = arith.cmpi slt, %3, %4 : vector<1x128xi32>
    %c0 = arith.constant 0 : index
    %c0_1 = arith.constant 0 : index
    %6 = vector.load %arg4[%c0, %c0_1] : memref<8x128xbf16, #tpu.memory_space<vmem>>, vector<8x128xbf16>
    %c0_2 = arith.constant 0 : index
    %c0_3 = arith.constant 0 : index
    %7 = vector.load %arg1[%c0_2, %c0_3] : memref<16x1xi32, #tpu.memory_space<vmem>>, vector<16x1xi32>
    %c0_4 = arith.constant 0 : index
    %c0_5 = arith.constant 0 : index
    %8 = vector.load %arg2[%c0_4, %c0_5] : memref<16x1xi32, #tpu.memory_space<vmem>>, vector<16x1xi32>
    %c0_6 = arith.constant 0 : index
    %c0_7 = arith.constant 0 : index
    %9 = vector.load %arg3[%c0_6, %c0_7] : memref<1x16xi32, #tpu.memory_space<vmem>>, vector<1x16xi32>
    %10 = tpu.iota {dimensions = array<i32: 1>} : vector<16x8xi32>
    %11 = vector.broadcast %7 : vector<16x1xi32> to vector<16x8xi32>
    %12 = arith.cmpi eq, %10, %11 : vector<16x8xi32>
    %13 = arith.extui %12 : vector<16x8xi1> to vector<16x8xi32>
    %14 = arith.sitofp %13 : vector<16x8xi32> to vector<16x8xf32>
    %15 = arith.truncf %14 : vector<16x8xf32> to vector<16x8xbf16>
    %16 = vector.broadcast %8 : vector<16x1xi32> to vector<16x8xi32>
    %17 = arith.cmpi eq, %10, %16 : vector<16x8xi32>
    %18 = arith.extui %17 : vector<16x8xi1> to vector<16x8xi32>
    %19 = arith.sitofp %18 : vector<16x8xi32> to vector<16x8xf32>
    %20 = arith.truncf %19 : vector<16x8xf32> to vector<16x8xbf16>
    %21 = tpu.iota {dimensions = array<i32: 0>} : vector<8x16xi32>
    %22 = vector.broadcast %9 : vector<1x16xi32> to vector<8x16xi32>
    %23 = arith.cmpi eq, %21, %22 : vector<8x16xi32>
    %24 = arith.extui %23 : vector<8x16xi1> to vector<8x16xi32>
    %25 = arith.sitofp %24 : vector<8x16xi32> to vector<8x16xf32>
    %26 = arith.truncf %25 : vector<8x16xf32> to vector<8x16xbf16>
    %cst = arith.constant dense<0.000000e+00> : vector<16x128xf32>
    %27 = tpu.matmul %15, %6, %cst {dimension_numbers = #tpu.dot_dimension_numbers<[1], [0], [0], [1], [0, 0, 1, 1], [], []>} : vector<16x8xbf16>, vector<8x128xbf16>, vector<16x128xf32> -> vector<16x128xf32>
    %cst_8 = arith.constant dense<0.000000e+00> : vector<16x128xf32>
    %28 = tpu.matmul %20, %6, %cst_8 {dimension_numbers = #tpu.dot_dimension_numbers<[1], [0], [0], [1], [0, 0, 1, 1], [], []>} : vector<16x8xbf16>, vector<8x128xbf16>, vector<16x128xf32> -> vector<16x128xf32>
    %29 = arith.truncf %27 : vector<16x128xf32> to vector<16x128xbf16>
    %30 = arith.truncf %28 : vector<16x128xf32> to vector<16x128xbf16>
    %31 = arith.subf %27, %28 : vector<16x128xf32>
    %32 = arith.mulf %31, %31 : vector<16x128xf32>
    %c0_9 = arith.constant 0 : index
    %c0_10 = arith.constant 0 : index
    %33 = vector.load %arg11[%c0_9, %c0_10] : memref<1x128xf32, #tpu.memory_space<vmem>>, vector<1x128xf32>
    %34 = vector.broadcast %33 : vector<1x128xf32> to vector<16x128xf32>
    %35 = arith.mulf %32, %34 : vector<16x128xf32>
    %cst_11 = arith.constant dense<0.000000e+00> : vector<16xf32>
    %36 = vector.multi_reduction <add>, %35, %cst_11 [1] : vector<16x128xf32> to vector<16xf32>
    %37 = vector.shape_cast %36 : vector<16xf32> to vector<16x1xf32>
    %38 = math.sqrt %37 : vector<16x1xf32>
    %c0_12 = arith.constant 0 : index
    %c0_13 = arith.constant 0 : index
    %39 = vector.load %arg5[%c0_12, %c0_13] : memref<128x128xbf16, #tpu.memory_space<vmem>>, vector<128x128xbf16>
    %cst_14 = arith.constant dense<0.000000e+00> : vector<16x128xf32>
    %40 = tpu.matmul %29, %39, %cst_14 {dimension_numbers = #tpu.dot_dimension_numbers<[1], [0], [0], [1], [0, 0, 1, 1], [], []>} : vector<16x128xbf16>, vector<128x128xbf16>, vector<16x128xf32> -> vector<16x128xf32>
    %c0_15 = arith.constant 0 : index
    %c0_16 = arith.constant 0 : index
    %41 = vector.load %arg6[%c0_15, %c0_16] : memref<128x128xbf16, #tpu.memory_space<vmem>>, vector<128x128xbf16>
    %cst_17 = arith.constant dense<0.000000e+00> : vector<16x128xf32>
    %42 = tpu.matmul %30, %41, %cst_17 {dimension_numbers = #tpu.dot_dimension_numbers<[1], [0], [0], [1], [0, 0, 1, 1], [], []>} : vector<16x128xbf16>, vector<128x128xbf16>, vector<16x128xf32> -> vector<16x128xf32>
    %43 = arith.addf %40, %42 : vector<16x128xf32>
    %c0_18 = arith.constant 0 : index
    %c0_19 = arith.constant 0 : index
    %44 = vector.load %arg7[%c0_18, %c0_19] : memref<1x128xf32, #tpu.memory_space<vmem>>, vector<1x128xf32>
    %45 = vector.broadcast %38 : vector<16x1xf32> to vector<16x128xf32>
    %46 = vector.broadcast %44 : vector<1x128xf32> to vector<16x128xf32>
    %47 = arith.mulf %45, %46 : vector<16x128xf32>
    %48 = arith.addf %43, %47 : vector<16x128xf32>
    %c0_20 = arith.constant 0 : index
    %c0_21 = arith.constant 0 : index
    %49 = vector.load %arg8[%c0_20, %c0_21] : memref<1x128xf32, #tpu.memory_space<vmem>>, vector<1x128xf32>
    %50 = vector.broadcast %49 : vector<1x128xf32> to vector<16x128xf32>
    %51 = arith.addf %48, %50 : vector<16x128xf32>
    %cst_22 = arith.constant 2.000000e+00 : f32
    %52 = vector.broadcast %cst_22 : f32 to vector<16x128xf32>
    %53 = arith.mulf %52, %51 : vector<16x128xf32>
    %54 = vector.shape_cast %5 : vector<1x128xi1> to vector<1x128xi1>
    %55 = vector.broadcast %54 : vector<1x128xi1> to vector<16x128xi1>
    %56 = arith.select %55, %51, %53 : vector<16x128xi1>, vector<16x128xf32>
    %57 = arith.negf %56 : vector<16x128xf32>
    %58 = math.exp %57 : vector<16x128xf32>
    %cst_23 = arith.constant 1.000000e+00 : f32
    %59 = vector.broadcast %cst_23 : f32 to vector<16x128xf32>
    %60 = arith.addf %59, %58 : vector<16x128xf32>
    %61 = arith.divf %59, %60 : vector<16x128xf32>
    %62 = arith.mulf %51, %61 : vector<16x128xf32>
    %cst_24 = arith.constant 2.000000e+00 : f32
    %63 = vector.broadcast %cst_24 : f32 to vector<16x128xf32>
    %64 = arith.mulf %63, %61 : vector<16x128xf32>
    %cst_25 = arith.constant 1.000000e+00 : f32
    %65 = vector.broadcast %cst_25 : f32 to vector<16x128xf32>
    %66 = arith.subf %64, %65 : vector<16x128xf32>
    %67 = vector.shape_cast %5 : vector<1x128xi1> to vector<1x128xi1>
    %68 = vector.broadcast %67 : vector<1x128xi1> to vector<16x128xi1>
    %69 = arith.select %68, %62, %66 : vector<16x128xi1>, vector<16x128xf32>
    %70 = arith.truncf %69 : vector<16x128xf32> to vector<16x128xbf16>
    %c0_26 = arith.constant 0 : index
    %c0_27 = arith.constant 0 : index
    %71 = vector.load %arg9[%c0_26, %c0_27] : memref<128x128xbf16, #tpu.memory_space<vmem>>, vector<128x128xbf16>
    %cst_28 = arith.constant dense<0.000000e+00> : vector<16x128xf32>
    %72 = tpu.matmul %70, %71, %cst_28 {dimension_numbers = #tpu.dot_dimension_numbers<[1], [0], [0], [1], [0, 0, 1, 1], [], []>} : vector<16x128xbf16>, vector<128x128xbf16>, vector<16x128xf32> -> vector<16x128xf32>
    %c0_29 = arith.constant 0 : index
    %c0_30 = arith.constant 0 : index
    %73 = vector.load %arg10[%c0_29, %c0_30] : memref<1x128xf32, #tpu.memory_space<vmem>>, vector<1x128xf32>
    %74 = vector.broadcast %73 : vector<1x128xf32> to vector<16x128xf32>
    %75 = arith.addf %72, %74 : vector<16x128xf32>
    %cst_31 = arith.constant 2.000000e+00 : f32
    %76 = vector.broadcast %cst_31 : f32 to vector<16x128xf32>
    %77 = arith.mulf %76, %75 : vector<16x128xf32>
    %78 = vector.shape_cast %5 : vector<1x128xi1> to vector<1x128xi1>
    %79 = vector.broadcast %78 : vector<1x128xi1> to vector<16x128xi1>
    %80 = arith.select %79, %75, %77 : vector<16x128xi1>, vector<16x128xf32>
    %81 = arith.negf %80 : vector<16x128xf32>
    %82 = math.exp %81 : vector<16x128xf32>
    %cst_32 = arith.constant 1.000000e+00 : f32
    %83 = vector.broadcast %cst_32 : f32 to vector<16x128xf32>
    %84 = arith.addf %83, %82 : vector<16x128xf32>
    %85 = arith.divf %83, %84 : vector<16x128xf32>
    %86 = arith.mulf %75, %85 : vector<16x128xf32>
    %cst_33 = arith.constant 2.000000e+00 : f32
    %87 = vector.broadcast %cst_33 : f32 to vector<16x128xf32>
    %88 = arith.mulf %87, %85 : vector<16x128xf32>
    %cst_34 = arith.constant 1.000000e+00 : f32
    %89 = vector.broadcast %cst_34 : f32 to vector<16x128xf32>
    %90 = arith.subf %88, %89 : vector<16x128xf32>
    %91 = vector.shape_cast %5 : vector<1x128xi1> to vector<1x128xi1>
    %92 = vector.broadcast %91 : vector<1x128xi1> to vector<16x128xi1>
    %93 = arith.select %92, %86, %90 : vector<16x128xi1>, vector<16x128xf32>
    %94 = arith.truncf %93 : vector<16x128xf32> to vector<16x128xbf16>
    %c0_35 = arith.constant 0 : index
    %c0_36 = arith.constant 0 : index
    %95 = vector.load %arg18[%c0_35, %c0_36] : memref<8x128xf32, #tpu.memory_space<vmem>>, vector<8x128xf32>
    %cst_37 = arith.constant dense<0.000000e+00> : vector<8x128xf32>
    %96 = tpu.matmul %26, %94, %cst_37 {dimension_numbers = #tpu.dot_dimension_numbers<[1], [0], [0], [1], [0, 0, 1, 1], [], []>} : vector<8x16xbf16>, vector<16x128xbf16>, vector<8x128xf32> -> vector<8x128xf32>
    %97 = arith.addf %95, %96 : vector<8x128xf32>
    %c0_38 = arith.constant 0 : index
    %c0_39 = arith.constant 0 : index
    %98 = vector.load %arg18[%c0_38, %c0_39] : memref<8x128xf32, #tpu.memory_space<vmem>>, vector<8x128xf32>
    tpu.vector_store %arg18[%c0_38, %c0_39], %97 {strides = array<i32>} : memref<8x128xf32, #tpu.memory_space<vmem>>, vector<8x128xf32>,
    %c0_i32_40 = arith.constant 0 : i32
    %99 = arith.cmpi eq, %arg0, %c0_i32_40 : i32
    %100 = arith.extui %99 : i1 to i32
    %c0_i32_41 = arith.constant 0 : i32
    %101 = arith.cmpi ne, %100, %c0_i32_41 : i32
    scf.if %101 {
      %c0_42 = arith.constant 0 : index
      %c0_43 = arith.constant 0 : index
      %102 = vector.load %arg18[%c0_42, %c0_43] : memref<8x128xf32, #tpu.memory_space<vmem>>, vector<8x128xf32>
      %103 = arith.truncf %102 : vector<8x128xf32> to vector<8x128xbf16>
      %c0_44 = arith.constant 0 : index
      %c0_45 = arith.constant 0 : index
      %104 = vector.load %arg12[%c0_44, %c0_45] : memref<128x128xbf16, #tpu.memory_space<vmem>>, vector<128x128xbf16>
      %cst_46 = arith.constant dense<0.000000e+00> : vector<8x128xf32>
      %105 = tpu.matmul %6, %104, %cst_46 {dimension_numbers = #tpu.dot_dimension_numbers<[1], [0], [0], [1], [0, 0, 1, 1], [], []>} : vector<8x128xbf16>, vector<128x128xbf16>, vector<8x128xf32> -> vector<8x128xf32>
      %c0_47 = arith.constant 0 : index
      %c0_48 = arith.constant 0 : index
      %106 = vector.load %arg13[%c0_47, %c0_48] : memref<128x128xbf16, #tpu.memory_space<vmem>>, vector<128x128xbf16>
      %cst_49 = arith.constant dense<0.000000e+00> : vector<8x128xf32>
      %107 = tpu.matmul %103, %106, %cst_49 {dimension_numbers = #tpu.dot_dimension_numbers<[1], [0], [0], [1], [0, 0, 1, 1], [], []>} : vector<8x128xbf16>, vector<128x128xbf16>, vector<8x128xf32> -> vector<8x128xf32>
      %108 = arith.addf %105, %107 : vector<8x128xf32>
      %c0_50 = arith.constant 0 : index
      %c0_51 = arith.constant 0 : index
      %109 = vector.load %arg14[%c0_50, %c0_51] : memref<1x128xf32, #tpu.memory_space<vmem>>, vector<1x128xf32>
      %110 = vector.broadcast %109 : vector<1x128xf32> to vector<8x128xf32>
      %111 = arith.addf %108, %110 : vector<8x128xf32>
      %cst_52 = arith.constant 2.000000e+00 : f32
      %112 = vector.broadcast %cst_52 : f32 to vector<8x128xf32>
      %113 = arith.mulf %112, %111 : vector<8x128xf32>
      %114 = vector.shape_cast %5 : vector<1x128xi1> to vector<1x128xi1>
      %115 = vector.broadcast %114 : vector<1x128xi1> to vector<8x128xi1>
      %116 = arith.select %115, %111, %113 : vector<8x128xi1>, vector<8x128xf32>
      %117 = arith.negf %116 : vector<8x128xf32>
      %118 = math.exp %117 : vector<8x128xf32>
      %cst_53 = arith.constant 1.000000e+00 : f32
      %119 = vector.broadcast %cst_53 : f32 to vector<8x128xf32>
      %120 = arith.addf %119, %118 : vector<8x128xf32>
      %121 = arith.divf %119, %120 : vector<8x128xf32>
      %122 = arith.mulf %111, %121 : vector<8x128xf32>
      %cst_54 = arith.constant 2.000000e+00 : f32
      %123 = vector.broadcast %cst_54 : f32 to vector<8x128xf32>
      %124 = arith.mulf %123, %121 : vector<8x128xf32>
      %cst_55 = arith.constant 1.000000e+00 : f32
      %125 = vector.broadcast %cst_55 : f32 to vector<8x128xf32>
      %126 = arith.subf %124, %125 : vector<8x128xf32>
      %127 = vector.shape_cast %5 : vector<1x128xi1> to vector<1x128xi1>
      %128 = vector.broadcast %127 : vector<1x128xi1> to vector<8x128xi1>
      %129 = arith.select %128, %122, %126 : vector<8x128xi1>, vector<8x128xf32>
      %130 = arith.truncf %129 : vector<8x128xf32> to vector<8x128xbf16>
      %c0_56 = arith.constant 0 : index
      %c0_57 = arith.constant 0 : index
      %131 = vector.load %arg15[%c0_56, %c0_57] : memref<128x128xbf16, #tpu.memory_space<vmem>>, vector<128x128xbf16>
      %cst_58 = arith.constant dense<0.000000e+00> : vector<8x128xf32>
      %132 = tpu.matmul %130, %131, %cst_58 {dimension_numbers = #tpu.dot_dimension_numbers<[1], [0], [0], [1], [0, 0, 1, 1], [], []>} : vector<8x128xbf16>, vector<128x128xbf16>, vector<8x128xf32> -> vector<8x128xf32>
      %c0_59 = arith.constant 0 : index
      %c0_60 = arith.constant 0 : index
      %133 = vector.load %arg16[%c0_59, %c0_60] : memref<1x128xf32, #tpu.memory_space<vmem>>, vector<1x128xf32>
      %134 = vector.broadcast %133 : vector<1x128xf32> to vector<8x128xf32>
      %135 = arith.addf %132, %134 : vector<8x128xf32>
      %136 = math.tanh %135 : vector<8x128xf32>
      %137 = vector.shape_cast %5 : vector<1x128xi1> to vector<1x128xi1>
      %138 = vector.broadcast %137 : vector<1x128xi1> to vector<8x128xi1>
      %139 = arith.select %138, %135, %136 : vector<8x128xi1>, vector<8x128xf32>
      %c0_61 = arith.constant 0 : index
      %c0_62 = arith.constant 0 : index
      %140 = vector.load %arg17[%c0_61, %c0_62] : memref<8x128xf32, #tpu.memory_space<vmem>>, vector<8x128xf32>
      tpu.vector_store %arg17[%c0_61, %c0_62], %139 {strides = array<i32>} : memref<8x128xf32, #tpu.memory_space<vmem>>, vector<8x128xf32>,
    } else {
    }
    return
  }
  func.func @transform_0(%arg0: i32) -> (i32, i32) {
    %c0_i32 = arith.constant 0 : i32
    %c0_i32_0 = arith.constant 0 : i32
    return %arg0, %c0_i32 : i32, i32
  }
  func.func @transform_1(%arg0: i32) -> (i32, i32) {
    %c0_i32 = arith.constant 0 : i32
    %c0_i32_0 = arith.constant 0 : i32
    return %arg0, %c0_i32 : i32, i32
  }
  func.func @transform_2(%arg0: i32) -> (i32, i32) {
    %c0_i32 = arith.constant 0 : i32
    %c0_i32_0 = arith.constant 0 : i32
    return %c0_i32, %arg0 : i32, i32
  }
  func.func @transform_3(%arg0: i32) -> (i32, i32) {
    %c0_i32 = arith.constant 0 : i32
    %c0_i32_0 = arith.constant 0 : i32
    %c0_i32_1 = arith.constant 0 : i32
    return %c0_i32, %c0_i32_0 : i32, i32
  }
  func.func @transform_4(%arg0: i32) -> (i32, i32) {
    %c0_i32 = arith.constant 0 : i32
    %c0_i32_0 = arith.constant 0 : i32
    %c0_i32_1 = arith.constant 0 : i32
    return %c0_i32, %c0_i32_0 : i32, i32
  }
  func.func @transform_5(%arg0: i32) -> (i32, i32) {
    %c0_i32 = arith.constant 0 : i32
    %c0_i32_0 = arith.constant 0 : i32
    %c0_i32_1 = arith.constant 0 : i32
    return %c0_i32, %c0_i32_0 : i32, i32
  }
  func.func @transform_6(%arg0: i32) -> (i32, i32) {
    %c0_i32 = arith.constant 0 : i32
    %c0_i32_0 = arith.constant 0 : i32
    %c0_i32_1 = arith.constant 0 : i32
    return %c0_i32, %c0_i32_0 : i32, i32
  }
  func.func @transform_7(%arg0: i32) -> (i32, i32) {
    %c0_i32 = arith.constant 0 : i32
    %c0_i32_0 = arith.constant 0 : i32
    %c0_i32_1 = arith.constant 0 : i32
    return %c0_i32, %c0_i32_0 : i32, i32
  }
  func.func @transform_8(%arg0: i32) -> (i32, i32) {
    %c0_i32 = arith.constant 0 : i32
    %c0_i32_0 = arith.constant 0 : i32
    %c0_i32_1 = arith.constant 0 : i32
    return %c0_i32, %c0_i32_0 : i32, i32
  }
  func.func @transform_9(%arg0: i32) -> (i32, i32) {
    %c0_i32 = arith.constant 0 : i32
    %c0_i32_0 = arith.constant 0 : i32
    %c0_i32_1 = arith.constant 0 : i32
    return %c0_i32, %c0_i32_0 : i32, i32
  }
  func.func @transform_10(%arg0: i32) -> (i32, i32) {
    %c0_i32 = arith.constant 0 : i32
    %c0_i32_0 = arith.constant 0 : i32
    %c0_i32_1 = arith.constant 0 : i32
    return %c0_i32, %c0_i32_0 : i32, i32
  }
  func.func @transform_11(%arg0: i32) -> (i32, i32) {
    %c0_i32 = arith.constant 0 : i32
    %c0_i32_0 = arith.constant 0 : i32
    %c0_i32_1 = arith.constant 0 : i32
    return %c0_i32, %c0_i32_0 : i32, i32
  }
  func.func @transform_12(%arg0: i32) -> (i32, i32) {
    %c0_i32 = arith.constant 0 : i32
    %c0_i32_0 = arith.constant 0 : i32
    %c0_i32_1 = arith.constant 0 : i32
    return %c0_i32, %c0_i32_0 : i32, i32
  }
  func.func @transform_13(%arg0: i32) -> (i32, i32) {
    %c0_i32 = arith.constant 0 : i32
    %c0_i32_0 = arith.constant 0 : i32
    %c0_i32_1 = arith.constant 0 : i32
    return %c0_i32, %c0_i32_0 : i32, i32
  }
  func.func @transform_14(%arg0: i32) -> (i32, i32) {
    %c0_i32 = arith.constant 0 : i32
    %c0_i32_0 = arith.constant 0 : i32
    %c0_i32_1 = arith.constant 0 : i32
    return %c0_i32, %c0_i32_0 : i32, i32
  }
  func.func @transform_15(%arg0: i32) -> (i32, i32) {
    %c0_i32 = arith.constant 0 : i32
    %c0_i32_0 = arith.constant 0 : i32
    %c0_i32_1 = arith.constant 0 : i32
    return %c0_i32, %c0_i32_0 : i32, i32
  }
  func.func @transform_16(%arg0: i32) -> (i32, i32) {
    %c0_i32 = arith.constant 0 : i32
    %c0_i32_0 = arith.constant 0 : i32
    %c0_i32_1 = arith.constant 0 : i32
    return %c0_i32, %c0_i32_0 : i32, i32
  }
}

</mosaic_0001>

<bundles_post_ra>
// kernel: tpu_custom_call.1
= control target key start
LH: loop header
LB: loop body
LE: loop exit
PB: predicated region body
PF: predicated region fallthrough
CT: control target
= control target key end

     0   :  { %s1910_s0 = inlined_call_operand.vmem [shape: s32[16,1], index: 0, kind: input, shape index: {}]   ;;  %s1911_s1 = inlined_call_operand.vmem [shape: s32[16,1], index: 1, kind: input, shape index: {}]   ;;  %s1912_s2 = inlined_call_operand.vmem [shape: s32[1,16], index: 2, kind: input, shape index: {}]   ;;  %s1913_s3 = inlined_call_operand.vmem [shape: bf16[8,128], index: 3, kind: input, shape index: {}]   ;;  %s1914_s4 = inlined_call_operand.hbm [shape: bf16[128,128], index: 4, kind: input, shape index: {}]   ;;  %s1915_s5 = inlined_call_operand.hbm [shape: bf16[128,128], index: 5, kind: input, shape index: {}]   ;;  %s1916_s6 = inlined_call_operand.vmem [shape: f32[1,128], index: 6, kind: input, shape index: {}]   ;;  %s1917_s7 = inlined_call_operand.vmem [shape: f32[1,128], index: 7, kind: input, shape index: {}]   ;;  %s1918_s8 = inlined_call_operand.hbm [shape: bf16[128,128], index: 8, kind: input, shape index: {}]   ;;  %s1919_s9 = inlined_call_operand.vmem [shape: f32[1,128], index: 9, kind: input, shape index: {}]   ;;  %s1920_s10 = inlined_call_operand.vmem [shape: f32[1,128], index: 10, kind: input, shape index: {}]   ;;  %s1921_s11 = inlined_call_operand.hbm [shape: bf16[128,128], index: 11, kind: input, shape index: {}]   ;;  %s1922_s12 = inlined_call_operand.hbm [shape: bf16[128,128], index: 12, kind: input, shape index: {}]   ;;  %s1923_s13 = inlined_call_operand.vmem [shape: f32[1,128], index: 13, kind: input, shape index: {}]   ;;  %s1924_s14 = inlined_call_operand.hbm [shape: bf16[128,128], index: 14, kind: input, shape index: {}]   ;;  %s1925_s15 = inlined_call_operand.vmem [shape: f32[1,128], index: 15, kind: input, shape index: {}]   ;;  %s1926_s16 = inlined_call_operand.hbm [shape: f32[8,128], index: 16, kind: output, shape index: {}]  }
   0x1   :  { %1928 = sst [smem:[#allocation20_spill]] %s1910_s0 }
   0x2   :  { %21 = vsyncpa [#allocation4], 0 }
   0x3   :  { %22 = vsyncpa [#allocation7], 0 }
   0x4   :  { %23 = vsyncpa [#allocation10], 0 }
   0x5   :  { %24 = vsyncpa [#allocation13], 0 }
   0x6   :  { %25 = vsyncpa [#allocation5], 0  ;;  %s1629_s21 = smov [#allocation6]   ;;  %s1630_s23 = smov [#allocation9]  }
   0x7   :  { %s51_s22 = sshll.u32 %s1629_s21, 4  ;;  %s83_s24 = sshll.u32 %s1630_s23, 4  ;;  %s52_s22 = int_to_ptr.vmem [resolvable:$true] %s51_s22  ;;  %s84_s24 = int_to_ptr.vmem [resolvable:$true] %s83_s24 }
   0x8   :  { %s1487_s25 = scalar_lea.vmem %s52_s22, 1024  ;;  %p1492_p1 = scmp.lt.s32.totalorder %s52_s22, %s52_s22 }
   0x9   :  { %p1488_p0 = scmp.ne.s32.totalorder %s52_s22, %s1487_s25  ;;  %p1493_p2 = scmp.lt.s32.totalorder %s1487_s25, %s1487_s25 }
   0xb   :  { %p1494_p3 = por %p1493_p2, %p1492_p1 }
   0xd   :  { %p1495_p4 = pnand %p1494_p3, %p1488_p0 }
   0xf   :  { %1498 = shalt.err (!%p1495_p4)
}
  0x10   :  { %s1631_s26 = smov 64   ;;  %s1632_s27 = smov 4  }
  0x11   :  { %57 = dma.hbm_to_vmem [thread:$0]  %s1915_s5, 1024, %s52_s22, [#allocation7], %s1631_s26, %s1631_s26, %s1632_s27  }
  0x12   :  { %s1507_s30 = scalar_lea.vmem %s84_s24, 1024  ;;  %p1512_p6 = scmp.lt.s32.totalorder %s84_s24, %s84_s24 }
  0x13   :  { %p1508_p5 = scmp.ne.s32.totalorder %s84_s24, %s1507_s30  ;;  %p1513_p7 = scmp.lt.s32.totalorder %s1507_s30, %s1507_s30 }
  0x15   :  { %p1514_p8 = por %p1513_p7, %p1512_p6 }
  0x17   :  { %p1515_p9 = pnand %p1514_p8, %p1508_p5 }
  0x19   :  { %1518 = shalt.err (!%p1515_p9)
}
  0x1a   :  { %89 = dma.hbm_to_vmem [thread:$0]  %s1921_s11, 1024, %s84_s24, [#allocation10], %s1631_s26, %s1631_s26, %s1632_s27  }
  0x1b   :  { %s1633_s18 = smov [#allocation3]   ;;  %s1634_s20 = smov [#allocation8]  }
  0x1c   :  { %s39_s19 = sshll.u32 %s1633_s18, 4  ;;  %s67_s21 = sshll.u32 %s1634_s20, 4  ;;  %s40_s19 = int_to_ptr.vmem [resolvable:$true] %s39_s19  ;;  %s68_s21 = int_to_ptr.vmem [resolvable:$true] %s67_s21 }
  0x1d   :  { %s1527_s5 = scalar_lea.vmem %s40_s19, 1024  ;;  %p1532_p11 = scmp.lt.s32.totalorder %s40_s19, %s40_s19 }
  0x1e   :  { %p1528_p10 = scmp.ne.s32.totalorder %s40_s19, %s1527_s5  ;;  %p1533_p12 = scmp.lt.s32.totalorder %s1527_s5, %s1527_s5 }
  0x20   :  { %p1534_p13 = por %p1533_p12, %p1532_p11 }
  0x22   :  { %p1535_p0 = pnand %p1534_p13, %p1528_p10 }
  0x24   :  { %1538 = shalt.err (!%p1535_p0)
}
  0x25   :  { %45 = dma.hbm_to_vmem [thread:$0]  %s1914_s4, 1024, %s40_s19, [#allocation4], %s1631_s26, %s1631_s26, %s1632_s27  }
  0x26   :  { %s1547_s11 = scalar_lea.vmem %s68_s21, 1024  ;;  %p1552_p2 = scmp.lt.s32.totalorder %s68_s21, %s68_s21 }
  0x27   :  { %p1548_p1 = scmp.ne.s32.totalorder %s68_s21, %s1547_s11  ;;  %p1553_p3 = scmp.lt.s32.totalorder %s1547_s11, %s1547_s11 }
  0x29   :  { %p1554_p4 = por %p1553_p3, %p1552_p2 }
  0x2b   :  { %p1555_p5 = pnand %p1554_p4, %p1548_p1 }
  0x2d   :  { %1558 = shalt.err (!%p1555_p5)
}
  0x2e   :  { %73 = dma.hbm_to_vmem [thread:$0]  %s1918_s8, 1024, %s68_s21, [#allocation7], %s1631_s26, %s1631_s26, %s1632_s27  }
  0x2f   :  { %s1635_s28 = smov [#allocation11]   ;;  %s1636_s30 = smov [#allocation12]  }
  0x30   :  { %s95_s29 = sshll.u32 %s1635_s28, 4  ;;  %s109_s0 = sshll.u32 %s1636_s30, 4  ;;  %s96_s29 = int_to_ptr.vmem [resolvable:$true] %s95_s29  ;;  %s110_s0 = int_to_ptr.vmem [resolvable:$true] %s109_s0 }
  0x31   :  { %s1567_s4 = scalar_lea.vmem %s96_s29, 1024  ;;  %p1572_p7 = scmp.lt.s32.totalorder %s96_s29, %s96_s29 }
  0x32   :  { %p1568_p6 = scmp.ne.s32.totalorder %s96_s29, %s1567_s4  ;;  %p1573_p8 = scmp.lt.s32.totalorder %s1567_s4, %s1567_s4 }
  0x34   :  { %p1574_p9 = por %p1573_p8, %p1572_p7 }
  0x36   :  { %p1575_p10 = pnand %p1574_p9, %p1568_p6 }
  0x38   :  { %1578 = shalt.err (!%p1575_p10)
}
  0x39   :  { %101 = dma.hbm_to_vmem [thread:$0]  %s1922_s12, 1024, %s96_s29, [#allocation10], %s1631_s26, %s1631_s26, %s1632_s27  }
  0x3a   :  { %s1587_s8 = scalar_lea.vmem %s110_s0, 1024  ;;  %p1592_p12 = scmp.lt.s32.totalorder %s110_s0, %s110_s0 }
  0x3b   :  { %p1588_p11 = scmp.ne.s32.totalorder %s110_s0, %s1587_s8  ;;  %p1593_p13 = scmp.lt.s32.totalorder %s1587_s8, %s1587_s8 }
  0x3d   :  { %p1594_p0 = por %p1593_p13, %p1592_p12 }
  0x3f   :  { %p1595_p1 = pnand %p1594_p0, %p1588_p11 }
  0x41   :  { %1598 = shalt.err (!%p1595_p1)
}
  0x42   :  { %115 = dma.hbm_to_vmem [thread:$0]  %s1924_s14, 1024, %s110_s0, [#allocation13], %s1631_s26, %s1631_s26, %s1632_s27  }
  0x43   :  { %1619 = dma.done.wait [#allocation4], 1024  }
  0x44   :  { %1620 = vsyncadd [#allocation4], 4294966272 }
  0x45   :  { %1621 = dma.done.wait [#allocation7], 2048  }
  0x46   :  { %1622 = vsyncadd [#allocation7], 4294965248 }
  0x47   :  { %1623 = dma.done.wait [#allocation10], 2048  }
  0x48   :  { %1624 = vsyncadd [#allocation10], 4294965248 }
  0x49   :  { %1625 = dma.done.wait [#allocation13], 1024  }
  0x4a   :  { %1626 = vsyncadd [#allocation13], 4294966272  ;;  %v1637_v0 = vmov 0   ;;  %v1638_v1 = vmov 0.0   ;;  %v148_v2 = vld [vmem:[%s1911_s1] sm:$0xff]  ;;  %s1929_s27 = sld [smem:[#allocation20_spill]]  ;;  %v142_v8 = vlaneseq }
  0x4b   :  { %1404 = vset.pattern.permute.xlu1 %v1637_v0  ;;  %1403 = vset.pattern.permute.xlu0 %v1637_v0  ;;  %vm191_vm0 = vcmask 1043456   ;;  %v149_v4 = vld [vmem:[%s1911_s1 + $0x8] sm:$0xff]  ;;  %v1776_v5 = vld [vmem:[%s1913_s3] sm:$0xf]  ;;  %vm1639_vm1 = vmmov 0   ;;  %vm187_vm6 = vcmask 64512  }
  0x4c   :  { %1253 = vmatprep.subr.bf16.mxu0 %v1638_v1  ;;  %1259 = vmatprep.subr.bf16.mxu1 %v1638_v1  ;;  %v193_v7 = vsel %vm191_vm0, %v1776_v5, 0  ;;  %v1789_v9 = vand.u32 127, %v142_v8  ;;  %v1405_v18 = vld [vmem:[#allocation6 + $0x38] sm:$0xff]   ;;  %v1407_v22 = vld [vmem:[#allocation6 + $0x30] sm:$0xff]   ;;  %v1409_v24 = vld [vmem:[#allocation6 + $0x28] sm:$0xff]   ;;  %vm708_vm13 = vcmask 130048  }
  0x4d   :  { %165 = vperm.xlu1 %1404, %v148_v2   ;;  %1254 = vmatpush3.bf16.msra.mxu0 %v193_v7  ;;  %v1406_v19 = vld [vmem:[#allocation3 + $0x38] sm:$0xff]   ;;  %v1408_v23 = vld [vmem:[#allocation3 + $0x30] sm:$0xff]   ;;  %v1410_v25 = vld [vmem:[#allocation3 + $0x28] sm:$0xff]   ;;  %s1640_s18 = smov [#allocation14]  }
  0x4e   :  { %1260 = vmatpush3.bf16.msra.mxu1 %v193_v7  ;;  %1255 = vmatprep.mubr.msk.bf16.mxu0 %vm1639_vm1, %v1638_v1  ;;  %v1411_v26 = vld [vmem:[#allocation6 + $0x20] sm:$0xff]   ;;  %v1413_v28 = vld [vmem:[#allocation6 + $0x18] sm:$0xff]   ;;  %v1415_v30 = vld [vmem:[#allocation6 + $0x10] sm:$0xff]   ;;  %vm144_vm11 = vcmp.lt.s32.totalorder %v1789_v9, 32  ;;  %s1108_s8 = sshll.u32 %s1640_s18, 4  ;;  %s1109_s8 = int_to_ptr.vmem [resolvable:$true] %s1108_s8 }
  0x4f   :  { %1261 = vmatprep.mubr.msk.bf16.mxu1 %vm1639_vm1, %v1638_v1  ;;  %1265 = vmatprep.subr.bf16.mxu0 %v1638_v1  ;;  %v1412_v27 = vld [vmem:[#allocation3 + $0x20] sm:$0xff]   ;;  %v1414_v29 = vld [vmem:[#allocation3 + $0x18] sm:$0xff]   ;;  %v1416_v31 = vld [vmem:[#allocation3 + $0x10] sm:$0xff]   ;;  %s1599_s19 = scalar_lea.vmem %s1109_s8, 128  ;;  %p1604_p3 = scmp.lt.s32.totalorder %s1109_s8, %s1109_s8 }
  0x50   :  { %v146_v3 = vld [vmem:[%s1929_s27] sm:$0xff]  ;;  %v147_v6 = vld [vmem:[%s1929_s27 + $0x8] sm:$0xff]  ;;  %1285 = vmatprep.subr.bf16.mxu1 %v1638_v1  ;;  %v1421_v53 = vld [vmem:[#allocation8 + $0x38] sm:$0xff]   ;;  %p1600_p2 = scmp.ne.s32.totalorder %s1109_s8, %s1599_s19  ;;  %p1605_p4 = scmp.lt.s32.totalorder %s1599_s19, %s1599_s19 }
  0x51   :  { %152 = vperm.xlu0 %1403, %v146_v3   ;;  %168 = vperm.xlu1 %1404, %v149_v4   ;;  %v1417_v32 = vld [vmem:[#allocation6 + $0x8] sm:$0xff]   ;;  %v1419_v34 = vld [vmem:[#allocation6] sm:$0xff]   ;;  %v1422_v54 = vld [vmem:[#allocation8 + $0x30] sm:$0xff]  }
  0x52   :  { %v1418_v33 = vld [vmem:[#allocation3 + $0x8] sm:$0xff]   ;;  %v1420_v35 = vld [vmem:[#allocation3] sm:$0xff]   ;;  %v1425_v57 = vld [vmem:[#allocation8 + $0x18] sm:$0xff]   ;;  %p1606_p5 = por %p1605_p4, %p1604_p3 }
  0x53   :  { %v1128_v41 = vld [vmem:[%s1920_s10] ss:$0 sm:$0xff]  ;;  %v1423_v55 = vld [vmem:[#allocation8 + $0x28] sm:$0xff]   ;;  %v1426_v58 = vld [vmem:[#allocation8 + $0x10] sm:$0xff]  }
  0x54   :  { %v1424_v56 = vld [vmem:[#allocation8 + $0x20] sm:$0xff]   ;;  %v1427_v59 = vld [vmem:[#allocation8 + $0x8] sm:$0xff]   ;;  %p1607_p6 = pnand %p1606_p5, %p1600_p2 }
  0x55   :  { %155 = vperm.xlu0 %1403, %v147_v6   ;;  %v1428_v60 = vld [vmem:[#allocation8] sm:$0xff]  }
  0xc8   :  { %v166_v10 = vpop.permute.xlu1 %165 }
  0xc9   :  { %vm170_vm2 = vcmp.eq.s32.totalorder %v1789_v9, %v166_v10  ;;  %v1145_v10 = vld [vmem:[%s1916_s6] ss:$0 sm:$0xff] }
  0xca   :  { %v1122_v14 = vsel %vm170_vm2, 1.0, %v1638_v1 }
  0xcc   :  { %v153_v11 = vpop.permute.xlu0 %152  ;;  %v169_v12 = vpop.permute.xlu1 %168 }
  0xcd   :  { %vm157_vm3 = vcmp.eq.s32.totalorder %v1789_v9, %v153_v11  ;;  %vm171_vm4 = vcmp.eq.s32.totalorder %v1789_v9, %v169_v12 }
  0xce   :  { %v1120_v15 = vsel %vm157_vm3, 1.0, %v1638_v1  ;;  %v1123_v16 = vsel %vm171_vm4, 1.0, %v1638_v1 }
  0xcf   :  { %v176_v20 = vpack.c.bf16 %v1123_v16, %v1122_v14 }
  0xd0   :  { %v156_v13 = vpop.permute.xlu0 %155 }
  0xd1   :  { %vm158_vm5 = vcmp.eq.s32.totalorder %v1789_v9, %v156_v13  ;;  %1262 = vmatmul.mubr.msk.bf16.vlgmr.msra.gmra.mxu1 %vm187_vm6, %v176_v20 }
  0xd2   :  { %v1121_v17 = vsel %vm158_vm5, 1.0, %v1638_v1  ;;  %1286 = vmatpush3.bf16.msra.mxu1 %v1406_v19  ;;  %1301 = vmatprep.mubr.msk.bf16.mxu1 %vm1639_vm1, %v1638_v1 }
  0xd3   :  { %v163_v21 = vpack.c.bf16 %v1121_v17, %v1120_v15  ;;  %1287 = vmatprep.subr.bf16.mxu1 %v1638_v1 }
  0xd5   :  { %1256 = vmatmul.mubr.msk.bf16.vlgmr.msra.gmra.mxu0 %vm187_vm6, %v163_v21 }
  0xd6   :  { %1266 = vmatpush3.bf16.msra.mxu0 %v1405_v18  ;;  %1281 = vmatprep.mubr.msk.bf16.mxu0 %vm1639_vm1, %v1638_v1  ;;  %v1146_v18 = vld [vmem:[%s1917_s7] ss:$0 sm:$0xff] }
  0xd7   :  { %1267 = vmatprep.subr.bf16.mxu0 %v1638_v1  ;;  %1288 = vmatpush3.bf16.msra.mxu1 %v1408_v23 }
  0xd8   :  { %1289 = vmatprep.subr.bf16.mxu1 %v1638_v1 }
  0xda   :  { %1268 = vmatpush3.bf16.msra.mxu0 %v1407_v22 }
  0xdb   :  { %1269 = vmatprep.subr.bf16.mxu0 %v1638_v1  ;;  %1290 = vmatpush3.bf16.msra.mxu1 %v1410_v25 }
  0xdc   :  { %1291 = vmatprep.subr.bf16.mxu1 %v1638_v1 }
  0xde   :  { %1270 = vmatpush3.bf16.msra.mxu0 %v1409_v24 }
  0xdf   :  { %1271 = vmatprep.subr.bf16.mxu0 %v1638_v1  ;;  %1292 = vmatpush3.bf16.msra.mxu1 %v1412_v27 }
  0xe0   :  { %1293 = vmatprep.subr.bf16.mxu1 %v1638_v1 }
  0xe2   :  { %1272 = vmatpush3.bf16.msra.mxu0 %v1411_v26 }
  0xe3   :  { %1273 = vmatprep.subr.bf16.mxu0 %v1638_v1  ;;  %1294 = vmatpush3.bf16.msra.mxu1 %v1414_v29 }
  0xe4   :  { %1295 = vmatprep.subr.bf16.mxu1 %v1638_v1 }
  0xe6   :  { %1274 = vmatpush3.bf16.msra.mxu0 %v1413_v28 }
  0xe7   :  { %1275 = vmatprep.subr.bf16.mxu0 %v1638_v1  ;;  %1296 = vmatpush3.bf16.msra.mxu1 %v1416_v31 }
  0xe8   :  { %1297 = vmatprep.subr.bf16.mxu1 %v1638_v1 }
  0xea   :  { %1276 = vmatpush3.bf16.msra.mxu0 %v1415_v30 }
  0xeb   :  { %1277 = vmatprep.subr.bf16.mxu0 %v1638_v1  ;;  %1298 = vmatpush3.bf16.msra.mxu1 %v1418_v33 }
  0xec   :  { %1299 = vmatprep.subr.bf16.mxu1 %v1638_v1 }
  0xee   :  { %1278 = vmatpush3.bf16.msra.mxu0 %v1417_v32 }
  0xef   :  { %1279 = vmatprep.subr.bf16.mxu0 %v1638_v1  ;;  %1300 = vmatpush3.bf16.msra.mxu1 %v1420_v35 }
  0xf0   :  { %1325 = vmatprep.subr.bf16.mxu1 %v1638_v1 }
  0xf2   :  { %1280 = vmatpush3.bf16.msra.mxu0 %v1419_v34 }
  0xf3   :  { %1305 = vmatprep.subr.bf16.mxu0 %v1638_v1 }
 0x191   :  { %v273_v37 = vpop.f32.mrf.mxu1 }
 0x193   :  { %v1263_v40 = vpop.f32.mrf.mxu1 }
 0x195   :  { %v229_v36 = vpop.f32.mrf.mxu0  ;;  %v276_v44 = vpop.f32.mrf.mxu1 }
 0x196   :  { %v282_v38 = vsub.f32 %v229_v36, %v273_v37  ;;  %v281_v46 = vpack.c.bf16 %v276_v44, %v273_v37 }
 0x197   :  { %v1257_v39 = vpop.f32.mrf.mxu0  ;;  %v1264_v50 = vpop.f32.mrf.mxu1 }
 0x198   :  { %v284_v42 = vmul.f32 %v282_v38, %v282_v38  ;;  %1282 = vmatmul.mubr.bf16.vlgmr.msra.gmra.mxu0 %v281_v46 }
 0x199   :  { %v232_v43 = vpop.f32.mrf.mxu0  ;;  %1321 = vmatprep.mubr.msk.bf16.mxu0 %vm1639_vm1, %v1638_v1  ;;  %1306 = vmatpush3.bf16.msra.mxu0 %v1421_v53  ;;  %v1431_v53 = vld [vmem:[#allocation9 + $0x30] sm:$0xff]  }
 0x19a   :  { %v280_v45 = vpack.c.bf16 %v232_v43, %v229_v36  ;;  %v283_v47 = vsub.f32 %v232_v43, %v276_v44  ;;  %v293_v48 = vmul.f32 %v1128_v41, %v284_v42  ;;  %1307 = vmatprep.subr.bf16.mxu0 %v1638_v1 }
 0x19b   :  { %v1258_v49 = vpop.f32.mrf.mxu0 }
 0x19c   :  { %v285_v51 = vmul.f32 %v283_v47, %v283_v47  ;;  %295 = vadd.xlane.f32.xlu0 %v293_v48  ;;  %1302 = vmatmul.mubr.bf16.vlgmr.msra.gmra.mxu1 %v280_v45 }
 0x19d   :  { %1327 = vmatprep.mubr.msk.bf16.mxu1 %vm1639_vm1, %v1638_v1  ;;  %1308 = vmatpush3.bf16.msra.mxu0 %v1422_v54  ;;  %v1433_v54 = vld [vmem:[#allocation9 + $0x28] sm:$0xff]  }
 0x19e   :  { %v294_v52 = vmul.f32 %v1128_v41, %v285_v51  ;;  %1309 = vmatprep.subr.bf16.mxu0 %v1638_v1 }
 0x1a0   :  { %297 = vadd.xlane.f32.xlu1 %v294_v52  ;;  %v1429_v52 = vld [vmem:[#allocation9 + $0x38] sm:$0xff]  }
 0x1a1   :  { %1310 = vmatpush3.bf16.msra.mxu0 %v1423_v55  ;;  %v1435_v55 = vld [vmem:[#allocation9 + $0x20] sm:$0xff]  }
 0x1a2   :  { %1311 = vmatprep.subr.bf16.mxu0 %v1638_v1 }
 0x1a5   :  { %1312 = vmatpush3.bf16.msra.mxu0 %v1424_v56  ;;  %v1437_v56 = vld [vmem:[#allocation9 + $0x18] sm:$0xff]  }
 0x1a6   :  { %1313 = vmatprep.subr.bf16.mxu0 %v1638_v1 }
 0x1a9   :  { %1314 = vmatpush3.bf16.msra.mxu0 %v1425_v57  ;;  %v1439_v57 = vld [vmem:[#allocation9 + $0x10] sm:$0xff]  }
 0x1aa   :  { %1315 = vmatprep.subr.bf16.mxu0 %v1638_v1 }
 0x1ad   :  { %1316 = vmatpush3.bf16.msra.mxu0 %v1426_v58  ;;  %v1441_v58 = vld [vmem:[#allocation9 + $0x8] sm:$0xff]  }
 0x1ae   :  { %1317 = vmatprep.subr.bf16.mxu0 %v1638_v1 }
 0x1b1   :  { %1318 = vmatpush3.bf16.msra.mxu0 %v1427_v59  ;;  %v1443_v59 = vld [vmem:[#allocation9] sm:$0xff]  }
 0x1b2   :  { %1319 = vmatprep.subr.bf16.mxu0 %v1638_v1 }
 0x1b5   :  { %1320 = vmatpush3.bf16.msra.mxu0 %v1428_v60  ;;  %v1151_v60 = vld [vmem:[%s1919_s9] ss:$0 sm:$0xff] }
 0x1b6   :  { %1351 = vmatprep.subr.bf16.mxu0 %v1638_v1 }
 0x225   :  { %v296_v61 = vpop.xlane.xlu0 %295 }
 0x226   :  { %1453 = vrsqrt.f32 %v296_v61  ;;  %vm301_vm7 = vcmp.eq.f32.partialorder %v296_v61, inf  ;;  %v304_v6 = vand.u32 2147483648, %v296_v61  ;;  %vm303_vm8 = vcmp.eq.f32.partialorder %v296_v61, 0.0 }
 0x229   :  { %v298_v62 = vpop.xlane.xlu1 %297 }
 0x22a   :  { %1455 = vrsqrt.f32 %v298_v62  ;;  %vm308_vm9 = vcmp.eq.f32.partialorder %v298_v62, inf  ;;  %v311_v13 = vand.u32 2147483648, %v298_v62  ;;  %vm310_vm10 = vcmp.eq.f32.partialorder %v298_v62, 0.0 }
 0x233   :  { %v1454_v63 = vpop.eup %1453 }
 0x234   :  { %v300_v0 = vmul.f32 %v1454_v63, %v296_v61 }
 0x236   :  { %v302_v4 = vsel %vm301_vm7, %v296_v61, %v300_v0 }
 0x237   :  { %v1456_v2 = vpop.eup %1455  ;;  %v305_v7 = vsel %vm303_vm8, %v304_v6, %v302_v4 }
 0x238   :  { %v307_v3 = vmul.f32 %v1456_v2, %v298_v62  ;;  %v530_v16 = vmul.f32 %v1145_v10, %v305_v7 }
 0x23a   :  { %v309_v12 = vsel %vm308_vm9, %v298_v62, %v307_v3 }
 0x23b   :  { %v312_v20 = vsel %vm310_vm10, %v311_v13, %v309_v12 }
 0x23c   :  { %v531_v26 = vmul.f32 %v1145_v10, %v312_v20 }
 0x258   :  { %v427_v11 = vpop.f32.mrf.mxu0 }
 0x25a   :  { %v1283_v17 = vpop.f32.mrf.mxu0 }
 0x25c   :  { %v516_v14 = vpop.f32.mrf.mxu1  ;;  %v430_v22 = vpop.f32.mrf.mxu0 }
 0x25d   :  { %v517_v15 = vadd.f32 %v516_v14, %v427_v11 }
 0x25e   :  { %v1303_v19 = vpop.f32.mrf.mxu1  ;;  %v1284_v27 = vpop.f32.mrf.mxu0 }
 0x25f   :  { %v532_v21 = vadd.f32 %v530_v16, %v517_v15  ;;  %v1124_v19 = vld [vmem:[%s1912_s2] ss:$0 sm:$0xff] }
 0x260   :  { %v519_v23 = vpop.f32.mrf.mxu1 }
 0x261   :  { %v541_v24 = vadd.f32 %v1146_v18, %v532_v21  ;;  %v520_v25 = vadd.f32 %v519_v23, %v430_v22 }
 0x262   :  { %v1304_v28 = vpop.f32.mrf.mxu1 }
 0x263   :  { %v543_v29 = vmul.f32 2.0, %v541_v24  ;;  %v533_v30 = vadd.f32 %v531_v26, %v520_v25 }
 0x265   :  { %v547_v31 = vsel %vm144_vm11, %v541_v24, %v543_v29  ;;  %v542_v32 = vadd.f32 %v1146_v18, %v533_v30  ;;  %v178_v18 = vshrl.u32 %v142_v8, 7  ;;  %v1430_v30 = vld [vmem:[#allocation11 + $0x38] sm:$0xff]  }
 0x266   :  { %v1147_v33 = vmul.f32 -1.442695, %v547_v31  ;;  %v1432_v31 = vld [vmem:[#allocation11 + $0x30] sm:$0xff]  }
 0x267   :  { %v544_v34 = vmul.f32 2.0, %v542_v32  ;;  %vm183_vm12 = vcmp.eq.s32.totalorder %v178_v18, %v1124_v19 }
 0x268   :  { %1457 = vpow2.f32 %v1147_v33  ;;  %v1125_v26 = vsel %vm183_vm12, 1.0, %v1638_v1  ;;  %v1436_v33 = vld [vmem:[#allocation11 + $0x20] sm:$0xff]  }
 0x269   :  { %v548_v35 = vsel %vm144_vm11, %v542_v32, %v544_v34  ;;  %v186_v29 = vpack.c.bf16 %v1125_v26, %v1125_v26  ;;  %v1438_v34 = vld [vmem:[#allocation11 + $0x18] sm:$0xff]  }
 0x26a   :  { %v1148_v36 = vmul.f32 -1.442695, %v548_v35  ;;  %v1440_v35 = vld [vmem:[#allocation11 + $0x10] sm:$0xff]  }
 0x26c   :  { %1459 = vpow2.f32 %v1148_v36  ;;  %v1442_v36 = vld [vmem:[#allocation11 + $0x8] sm:$0xff]  }
 0x275   :  { %v1458_v37 = vpop.eup %1457 }
 0x276   :  { %v555_v38 = vadd.f32 1.0, %v1458_v37  ;;  %v1444_v37 = vld [vmem:[#allocation11] sm:$0xff]  }
 0x278   :  { %1461 = vrcp.f32 %v555_v38 }
 0x279   :  { %v1460_v39 = vpop.eup %1459 }
 0x27a   :  { %v556_v40 = vadd.f32 1.0, %v1460_v39 }
 0x27c   :  { %1463 = vrcp.f32 %v556_v40 }
 0x285   :  { %v1462_v41 = vpop.eup %1461 }
 0x286   :  { %v563_v42 = vmul.f32 2.0, %v1462_v41  ;;  %v561_v46 = vmul.f32 %v1462_v41, %v541_v24 }
 0x288   :  { %v1149_v45 = vadd.f32 -1.0, %v563_v42 }
 0x289   :  { %v1464_v43 = vpop.eup %1463 }
 0x28a   :  { %v564_v44 = vmul.f32 2.0, %v1464_v43  ;;  %v562_v47 = vmul.f32 %v1464_v43, %v542_v32  ;;  %v567_v49 = vsel %vm144_vm11, %v561_v46, %v1149_v45  ;;  %v1434_v32 = vld [vmem:[#allocation11 + $0x28] sm:$0xff]  }
 0x28c   :  { %v1150_v48 = vadd.f32 -1.0, %v564_v44 }
 0x28e   :  { %v568_v50 = vsel %vm144_vm11, %v562_v47, %v1150_v48  ;;  %v1445_v47 = vld [vmem:[#allocation12 + $0x38] sm:$0xff]   ;;  %v1446_v48 = vld [vmem:[#allocation12 + $0x30] sm:$0xff]  }
 0x28f   :  { %v569_v51 = vpack.c.bf16 %v568_v50, %v567_v49  ;;  %v1447_v49 = vld [vmem:[#allocation12 + $0x28] sm:$0xff]   ;;  %v1448_v50 = vld [vmem:[#allocation12 + $0x20] sm:$0xff]  }
 0x291   :  { %1322 = vmatmul.mubr.bf16.vlgmr.msra.gmra.mxu0 %v569_v51  ;;  %v1449_v51 = vld [vmem:[#allocation12 + $0x18] sm:$0xff]  }
 0x292   :  { %1367 = vmatprep.mubr.msk.bf16.mxu0 %vm1639_vm1, %v1638_v1  ;;  %1352 = vmatpush3.bf16.msra.mxu0 %v1429_v52  ;;  %v1450_v52 = vld [vmem:[#allocation12 + $0x10] sm:$0xff]  }
 0x293   :  { %1353 = vmatprep.subr.bf16.mxu0 %v1638_v1 }
 0x296   :  { %1354 = vmatpush3.bf16.msra.mxu0 %v1431_v53  ;;  %v1451_v53 = vld [vmem:[#allocation12 + $0x8] sm:$0xff]  }
 0x297   :  { %1355 = vmatprep.subr.bf16.mxu0 %v1638_v1 }
 0x29a   :  { %1356 = vmatpush3.bf16.msra.mxu0 %v1433_v54  ;;  %v1452_v54 = vld [vmem:[#allocation12] sm:$0xff]  }
 0x29b   :  { %1357 = vmatprep.subr.bf16.mxu0 %v1638_v1 }
 0x29e   :  { %1358 = vmatpush3.bf16.msra.mxu0 %v1435_v55 }
 0x29f   :  { %1359 = vmatprep.subr.bf16.mxu0 %v1638_v1 }
 0x2a2   :  { %1360 = vmatpush3.bf16.msra.mxu0 %v1437_v56  ;;  %v1181_v56 = vld [vmem:[%s1923_s13] ss:$0 sm:$0xff] }
 0x2a3   :  { %1361 = vmatprep.subr.bf16.mxu0 %v1638_v1 }
 0x2a6   :  { %1362 = vmatpush3.bf16.msra.mxu0 %v1439_v57 }
 0x2a7   :  { %1363 = vmatprep.subr.bf16.mxu0 %v1638_v1 }
 0x2aa   :  { %1364 = vmatpush3.bf16.msra.mxu0 %v1441_v58 }
 0x2ab   :  { %1365 = vmatprep.subr.bf16.mxu0 %v1638_v1 }
 0x2ae   :  { %1366 = vmatpush3.bf16.msra.mxu0 %v1443_v59 }
 0x2b1   :  { %1368 = vmatmul.mubr.bf16.vlgmr.msra.gmra.mxu0 %v1776_v5 }
 0x351   :  { %v675_v61 = vpop.f32.mrf.mxu0 }
 0x352   :  { %v676_v62 = vadd.f32 %v1151_v60, %v675_v61 }
 0x353   :  { %v1323_v63 = vpop.f32.mrf.mxu0 }
 0x354   :  { %v682_v0 = vmul.f32 2.0, %v676_v62 }
 0x355   :  { %v678_v2 = vpop.f32.mrf.mxu0 }
 0x356   :  { %v684_v3 = vsel %vm144_vm11, %v676_v62, %v682_v0  ;;  %v679_v4 = vadd.f32 %v1151_v60, %v678_v2 }
 0x357   :  { %v1160_v6 = vmul.f32 -1.442695, %v684_v3  ;;  %v1324_v7 = vpop.f32.mrf.mxu0 }
 0x358   :  { %v683_v10 = vmul.f32 2.0, %v679_v4 }
 0x359   :  { %1465 = vpow2.f32 %v1160_v6 }
 0x35a   :  { %v685_v5 = vsel %vm144_vm11, %v679_v4, %v683_v10 }
 0x35b   :  { %v1161_v11 = vmul.f32 -1.442695, %v685_v5 }
 0x35d   :  { %1467 = vpow2.f32 %v1161_v11  ;;  %v1184_v11 = vld [vmem:[%s1925_s15] ss:$0 sm:$0xff] }
 0x366   :  { %v1466_v12 = vpop.eup %1465 }
 0x367   :  { %v692_v13 = vadd.f32 1.0, %v1466_v12 }
 0x369   :  { %1469 = vrcp.f32 %v692_v13 }
 0x36a   :  { %v1468_v14 = vpop.eup %1467 }
 0x36b   :  { %v693_v15 = vadd.f32 1.0, %v1468_v14 }
 0x36d   :  { %1471 = vrcp.f32 %v693_v15 }
 0x371   :  { %v961_v38 = vpop.f32.mrf.mxu0 }
 0x373   :  { %v1369_v39 = vpop.f32.mrf.mxu0 }
 0x375   :  { %v964_v40 = vpop.f32.mrf.mxu0 }
 0x376   :  { %v1470_v16 = vpop.eup %1469 }
 0x377   :  { %v700_v17 = vmul.f32 2.0, %v1470_v16  ;;  %v698_v23 = vmul.f32 %v1470_v16, %v676_v62  ;;  %v1370_v41 = vpop.f32.mrf.mxu0 }
 0x379   :  { %v1162_v22 = vadd.f32 -1.0, %v700_v17 }
 0x37a   :  { %v1472_v20 = vpop.eup %1471 }
 0x37b   :  { %v701_v21 = vmul.f32 2.0, %v1472_v20  ;;  %v699_v24 = vmul.f32 %v1472_v20, %v679_v4  ;;  %v704_v27 = vsel %vm144_vm11, %v698_v23, %v1162_v22 }
 0x37d   :  { %v1163_v25 = vadd.f32 -1.0, %v701_v21 }
 0x37f   :  { %v705_v28 = vsel %vm144_vm11, %v699_v24, %v1163_v25 }
 0x380   :  { %v706_v8 = vpack.c.bf16 %v705_v28, %v704_v27 }
 0x382   :  { %1326 = vmatpush3.bf16.msra.mxu1 %v706_v8 }
 0x383   :  { %1331 = vmatprep.subr.bf16.mxu1 %v1638_v1 }
 0x385   :  { %1328 = vmatmul.mubr.msk.bf16.vlgmr.msra.gmra.mxu1 %vm708_vm13, %v186_v29 }
 0x386   :  { %1332 = vmatpush3.bf16.msra.mxu1 %v1430_v30  ;;  %1347 = vmatprep.mubr.msk.bf16.mxu1 %vm1639_vm1, %v1638_v1 }
 0x387   :  { %1333 = vmatprep.subr.bf16.mxu1 %v1638_v1 }
 0x38a   :  { %1334 = vmatpush3.bf16.msra.mxu1 %v1432_v31 }
 0x38b   :  { %1335 = vmatprep.subr.bf16.mxu1 %v1638_v1 }
 0x38e   :  { %1336 = vmatpush3.bf16.msra.mxu1 %v1434_v32 }
 0x38f   :  { %1337 = vmatprep.subr.bf16.mxu1 %v1638_v1 }
 0x392   :  { %1338 = vmatpush3.bf16.msra.mxu1 %v1436_v33 }
 0x393   :  { %1339 = vmatprep.subr.bf16.mxu1 %v1638_v1 }
 0x396   :  { %1340 = vmatpush3.bf16.msra.mxu1 %v1438_v34 }
 0x397   :  { %1341 = vmatprep.subr.bf16.mxu1 %v1638_v1 }
 0x39a   :  { %1342 = vmatpush3.bf16.msra.mxu1 %v1440_v35 }
 0x39b   :  { %1343 = vmatprep.subr.bf16.mxu1 %v1638_v1 }
 0x39e   :  { %1344 = vmatpush3.bf16.msra.mxu1 %v1442_v36 }
 0x39f   :  { %1345 = vmatprep.subr.bf16.mxu1 %v1638_v1 }
 0x3a2   :  { %1346 = vmatpush3.bf16.msra.mxu1 %v1444_v37 }
 0x3a3   :  { %1371 = vmatprep.subr.bf16.mxu1 %v1638_v1 }
 0x445   :  { %v746_v42 = vpop.f32.mrf.mxu1 }
 0x446   :  { %v758_v43 = vpack.c.bf16 %v746_v42, %v746_v42 }
 0x447   :  { %v1329_v44 = vpop.f32.mrf.mxu1 }
 0x448   :  { %1348 = vmatmul.mubr.bf16.vlgmr.msra.gmra.mxu1 %v758_v43 }
 0x449   :  { %v749_v45 = vpop.f32.mrf.mxu1  ;;  %1387 = vmatprep.mubr.msk.bf16.mxu1 %vm1639_vm1, %v1638_v1  ;;  %1372 = vmatpush3.bf16.msra.mxu1 %v1445_v47 }
 0x44a   :  { %1373 = vmatprep.subr.bf16.mxu1 %v1638_v1 }
 0x44b   :  { %v1330_v46 = vpop.f32.mrf.mxu1 }
 0x44d   :  { %1374 = vmatpush3.bf16.msra.mxu1 %v1446_v48 }
 0x44e   :  { %1375 = vmatprep.subr.bf16.mxu1 %v1638_v1 }
 0x451   :  { %1376 = vmatpush3.bf16.msra.mxu1 %v1447_v49 }
 0x452   :  { %1377 = vmatprep.subr.bf16.mxu1 %v1638_v1 }
 0x455   :  { %1378 = vmatpush3.bf16.msra.mxu1 %v1448_v50 }
 0x456   :  { %1379 = vmatprep.subr.bf16.mxu1 %v1638_v1 }
 0x459   :  { %1380 = vmatpush3.bf16.msra.mxu1 %v1449_v51 }
 0x45a   :  { %1381 = vmatprep.subr.bf16.mxu1 %v1638_v1 }
 0x45d   :  { %1382 = vmatpush3.bf16.msra.mxu1 %v1450_v52 }
 0x45e   :  { %1383 = vmatprep.subr.bf16.mxu1 %v1638_v1 }
 0x461   :  { %1384 = vmatpush3.bf16.msra.mxu1 %v1451_v53 }
 0x462   :  { %1385 = vmatprep.subr.bf16.mxu1 %v1638_v1 }
 0x465   :  { %1386 = vmatpush3.bf16.msra.mxu1 %v1452_v54 }
 0x508   :  { %v873_v55 = vpop.f32.mrf.mxu1 }
 0x509   :  { %v962_v57 = vadd.f32 %v961_v38, %v873_v55 }
 0x50a   :  { %v1349_v58 = vpop.f32.mrf.mxu1 }
 0x50b   :  { %v974_v59 = vadd.f32 %v1181_v56, %v962_v57 }
 0x50c   :  { %v876_v60 = vpop.f32.mrf.mxu1 }
 0x50d   :  { %v975_v61 = vmul.f32 2.0, %v974_v59 }
 0x50e   :  { %v1350_v62 = vpop.f32.mrf.mxu1 }
 0x50f   :  { %v976_v63 = vsel %vm144_vm11, %v974_v59, %v975_v61 }
 0x510   :  { %v1182_v0 = vmul.f32 -1.442695, %v976_v63 }
 0x512   :  { %1473 = vpow2.f32 %v1182_v0 }
 0x51f   :  { %v1474_v2 = vpop.eup %1473 }
 0x520   :  { %v980_v3 = vadd.f32 1.0, %v1474_v2 }
 0x522   :  { %1475 = vrcp.f32 %v980_v3 }
 0x52f   :  { %v1476_v1 = vpop.eup %1475 }
 0x530   :  { %v984_v4 = vmul.f32 2.0, %v1476_v1  ;;  %v983_v6 = vmul.f32 %v1476_v1, %v974_v59 }
 0x532   :  { %v1183_v7 = vadd.f32 -1.0, %v984_v4 }
 0x534   :  { %v986_v10 = vsel %vm144_vm11, %v983_v6, %v1183_v7 }
 0x535   :  { %v987_v5 = vpack.c.bf16 %v986_v10, %v986_v10 }
 0x537   :  { %1388 = vmatmul.mubr.bf16.vlgmr.msra.gmra.mxu1 %v987_v5 }
 0x5f7   :  { %v1093_v12 = vpop.f32.mrf.mxu1 }
 0x5f8   :  { %v1094_v13 = vadd.f32 %v1184_v11, %v1093_v12 }
 0x5f9   :  { %v1389_v14 = vpop.f32.mrf.mxu1 }
 0x5fa   :  { %1477 = vtanh.f32 %v1094_v13 }
 0x5fb   :  { %v1096_v15 = vpop.f32.mrf.mxu1 }
 0x5fd   :  { %v1390_v16 = vpop.f32.mrf.mxu1 }
 0x607   :  { %v1478_v17 = vpop.eup %1477 }
 0x608   :  { %v1100_v18 = vsel %vm144_vm11, %v1094_v13, %v1478_v17 }
 0x609   :  { %1101 = vst [vmem:[#allocation14] sm:$0xff] %v1100_v18 }
 0x60a   :  { %1610 = shalt.err (!%p1607_p6)
}
 0x60b   :  { %1111 = dma.vmem_to_hbm [thread:$0]  %s1109_s8, 128, %s1926_s16, [#allocation5]  }
 0x60c   :  { %1627 = dma.done.wait [#allocation5], 128  }
 0x60d   :  { %1628 = vsyncadd [#allocation5], 4294967168 }
 0x60e   :  { %1115 = vsyncpa [#allocation4], 1 }
 0x60f   :  { %1116 = vsyncpa [#allocation7], 1 }
 0x610   :  { %1117 = vsyncpa [#allocation10], 1 }
 0x611   :  { %1118 = vsyncpa [#allocation13], 1 }
 0x612   :  { %1119 = vsyncpa [#allocation5], 1 }

</bundles_post_ra>
